<compile_context>
chip_gen: v5e
topology: v5e:2x2
jax: 0.10.0
libtpu: 0.0.40
codegen_flags: <defaults>
</compile_context>

<pallas_src>
import functools

import jax
import jax.numpy as jnp
from jax import lax
from jax.experimental import pallas as pl
from jax.experimental.pallas import tpu as pltpu


def _round_up(n, m):
    return ((n + m - 1) // m) * m


def _pam_kernel(x_ref, w_ref, o_ref, *, cp, cout):
    """One batch element per grid step (leading batch dim squeezed).

    x_ref : (Cp, L)       bf16  augmented tokens [X ; ones ; zero-pad]
    w_ref : (Cp + Bp, Cp) bf16  stacked precomposed weights (see module docstring)
    o_ref : (Cout, L)     f32
    """
    f32, bf16 = jnp.float32, jnp.bfloat16
    x = x_ref[...]                                                   # (Cp, L)

    # Single stacked projection: rows [0, cp) = score block (M X ; mb X ; 0),
    # rows [cp, end) = value block (Wvo X + bvo ; ones ; 0).
    t = jnp.dot(w_ref[...], x, preferred_element_type=f32).astype(bf16)

    # sim[q, k] = x_q^T M x_k + mb.x_k  (key bias rides along via the ones row
    # of X_aug).  lhs-transposed contraction over channels; the (Cp, L) bf16
    # transpose is an XLU op that does not grow with L^2.
    sim = lax.dot_general(x, t[:cp],
                          dimension_numbers=(((0,), (0,)), ((), ())),
                          preferred_element_type=f32)                # (Lq, Lk)

    # Numerically stable, *unnormalized* softmax over keys.  exp stays f32
    # (safe on v5e, no bf16 VPU/EUP) and is cast straight to bf16 so no
    # separate f32 probability matrix is materialized.
    # TODO(synk): on v6e/v7x the sub/exp could run in bf16 for ~2x elementwise
    # throughput if a slightly looser tolerance is acceptable.
    pb = jnp.exp(sim - jnp.max(sim, axis=-1, keepdims=True)).astype(bf16)

    # Value matmul.  Row `cout` of the value block is the ones row, so the
    # softmax row sums come out of the same matmul for free.
    y = lax.dot_general(t[cp:], pb,
                        dimension_numbers=(((1,), (1,)), ((), ())),
                        preferred_element_type=f32)                  # (Bp, Lq)

    # Deferred normalization; output bias is already folded into the value
    # block (exact because softmax rows sum to one).
    # (Output kept f32 to match the module; emit bf16 here if the downstream
    # consumer tolerates it — output writeback dominates HBM traffic.)
    o_ref[...] = y[:cout] * pl.reciprocal(y[cout:cout + 1], approx=True)


def pam_pallas(x_aug, w_big, cout):
    """x_aug: (B, Cp, L) bf16, w_big: (Cp+Bp, Cp) bf16.  Returns (B, Cout, L) f32."""
    B, Cp, L = x_aug.shape
    Rp, _ = w_big.shape
    Bp = Rp - Cp

    kernel = functools.partial(_pam_kernel, cp=Cp, cout=cout)

    flops = B * (2 * Rp * Cp * L        # stacked projection
                 + 2 * L * L * Cp       # scores
                 + 2 * Bp * L * L       # value / row-sum matmul
                 + 4 * L * L)           # softmax elementwise
    cost = pl.CostEstimate(
        flops=flops,
        transcendentals=B * (L * L + L),
        bytes_accessed=B * (Cp * L * 2 + cout * L * 4) + Rp * Cp * 2,
    )

    return pl.pallas_call(
        kernel,
        out_shape=jax.ShapeDtypeStruct((B, cout, L), jnp.float32),
        grid_spec=pltpu.PrefetchScalarGridSpec(
            num_scalar_prefetch=0,
            grid=(B,),
            in_specs=[
                pl.BlockSpec((None, Cp, L), lambda b: (b, 0, 0)),   # x (squeezed)
                pl.BlockSpec((Rp, Cp), lambda b: (0, 0)),           # stacked weights
            ],
            out_specs=pl.BlockSpec((None, cout, L), lambda b: (b, 0, 0)),
        ),
        compiler_params=pltpu.CompilerParams(
            dimension_semantics=("parallel",)),
        cost_estimate=cost,
    )(x_aug, w_big)


# ----------------------------- host-side glue --------------------------------

def fold_bn(w, b, gamma, beta, mean, var, eps=1e-5):
    """Fold eval-mode BatchNorm2d into a preceding 1x1 conv.
    w: (Cout, Cin) conv weight, b: (Cout,) conv bias."""
    s = gamma / jnp.sqrt(var + eps)
    return w * s[:, None], (b - mean) * s + beta


def pam_forward(x_nchw, params):
    """Full PAM forward. x_nchw: (B, Cin, H, 2W) f32 -> (B, Cout, H, 2W) f32."""
    B, Cin, H, W2 = x_nchw.shape
    L = H * W2
    Ck = params["wq"].shape[0]
    scale = Ck ** -0.5

    wq_f, bq_f = fold_bn(params["wq"], params["bq"], params["q_gamma"],
                         params["q_beta"], params["q_mean"], params["q_var"])
    wk_f, bk_f = fold_bn(params["wk"], params["bk"], params["k_gamma"],
                         params["k_beta"], params["k_mean"], params["k_var"])

    # Precomposed score:  sim = X^T M X + mb X  (q-side bias terms cancel under
    # softmax over keys; the k-side bias term bq.(Wk x_j) is kept via mb).
    m_mat = scale * (wq_f.T @ wk_f)                 # (Cin, Cin)
    mb = scale * (bq_f @ wk_f)                      # (Cin,)

    # Precomposed value + output projection and bias (valid because softmax
    # rows sum to one):  out = (Wvo X + bvo 1^T) P^T / rowsum(P).
    wvo = params["wo"] @ params["wv"]               # (Cout, Cin)
    bvo = params["wo"] @ params["bv"]               # (Cout,)
    Cout = wvo.shape[0]

    # Pad both weight blocks to multiples of 16 sublanes so the bf16 slices of
    # the stacked projection inside the kernel stay (16,128)-tile aligned.
    Cp = _round_up(Cin + 1, 16)
    Bp = _round_up(Cout + 1, 16)

    w_big = jnp.zeros((Cp + Bp, Cp), jnp.float32)
    w_big = w_big.at[:Cin, :Cin].set(m_mat)          # score matrix
    w_big = w_big.at[Cin, :Cin].set(mb)              # key-side bias row
    w_big = w_big.at[Cp:Cp + Cout, :Cin].set(wvo)    # fused value+output proj
    w_big = w_big.at[Cp:Cp + Cout, Cin].set(bvo)     # output bias (x ones row)
    w_big = w_big.at[Cp + Cout, Cin].set(1.0)        # ones-selector -> row sums

    # NCHW is already channels-then-spatial: tokens are a plain reshape.
    x_tok = x_nchw.reshape(B, Cin, L)
    x_aug = jnp.zeros((B, Cp, L), jnp.float32)
    x_aug = x_aug.at[:, :Cin].set(x_tok)
    x_aug = x_aug.at[:, Cin].set(1.0)                # ones row (bias / row sums)

    out_tok = pam_pallas(x_aug.astype(jnp.bfloat16),
                         w_big.astype(jnp.bfloat16), Cout)
    return out_tok.reshape(B, Cout, H, W2)


# ------------------- pure-JAX f32 reference (torch semantics) ----------------

def pam_reference(x, p, eps=1e-5):
    def conv1x1(t, w, b=None):
        y = jnp.einsum("bchw,oc->bohw", t, w)
        return y if b is None else y + b[None, :, None, None]

    def bn(y, gamma, beta, mean, var):
        return (y - mean[None, :, None, None]) * (
            gamma[None, :, None, None] / jnp.sqrt(var[None, :, None, None] + eps)
        ) + beta[None, :, None, None]

    B, C, H, W2 = x.shape
    W = W2 // 2
    Ck = p["wq"].shape[0]
    value = conv1x1(x, p["wv"], p["bv"])
    query = bn(conv1x1(x, p["wq"], p["bq"]),
               p["q_gamma"], p["q_beta"], p["q_mean"], p["q_var"])
    key = bn(conv1x1(x, p["wk"], p["bk"]),
             p["k_gamma"], p["k_beta"], p["k_mean"], p["k_var"])

    def flat(t):  # torch: stack([..., :W], [..., W:], dim=4).view(B, C, -1)
        return jnp.stack([t[..., :W], t[..., W:]], axis=4).reshape(
            t.shape[0], t.shape[1], -1)

    v, q, k = flat(value), flat(query), flat(key)
    sim = jnp.einsum("bcl,bcm->blm", q, k)                 # (B, Lq, Lk)
    sim = jax.nn.softmax(Ck ** -0.5 * sim, axis=-1)
    ctx = jnp.einsum("bcl,bml->bcm", v, sim)               # bmm(V, sim^T)
    ctx = ctx.reshape(B, -1, H, W, 2)
    ctx = jnp.concatenate([ctx[..., 0], ctx[..., 1]], axis=3)  # (B, Cv, H, 2W)
    return conv1x1(ctx, p["wo"])


# ------------------------------------ main ------------------------------------

if __name__ == "__main__":
    # PAM(in_channels=32, out_channels=32, sizes=[1], ds=1)
    Cin, Cout = 32, 32
    Ck, Cv = Cout // 8, Cout
    B, H, W2 = 2, 16, 16        # input is N x C x H x (2W), so W = 8; L = 256

    key = jax.random.PRNGKey(0)
    ks = jax.random.split(key, 16)
    params = {
        "wv": jax.random.normal(ks[0], (Cv, Cin), jnp.float32) * 0.1,
        "bv": jax.random.normal(ks[1], (Cv,), jnp.float32) * 0.1,
        "wq": jax.random.normal(ks[2], (Ck, Cin), jnp.float32) * 0.1,
        "bq": jax.random.normal(ks[3], (Ck,), jnp.float32) * 0.1,
        "q_gamma": 1.0 + 0.1 * jax.random.normal(ks[4], (Ck,), jnp.float32),
        "q_beta": 0.1 * jax.random.normal(ks[5], (Ck,), jnp.float32),
        "q_mean": 0.1 * jax.random.normal(ks[6], (Ck,), jnp.float32),
        "q_var": 0.5 + jax.random.uniform(ks[7], (Ck,), jnp.float32),
        "wk": jax.random.normal(ks[8], (Ck, Cin), jnp.float32) * 0.1,
        "bk": jax.random.normal(ks[9], (Ck,), jnp.float32) * 0.1,
        "k_gamma": 1.0 + 0.1 * jax.random.normal(ks[10], (Ck,), jnp.float32),
        "k_beta": 0.1 * jax.random.normal(ks[11], (Ck,), jnp.float32),
        "k_mean": 0.1 * jax.random.normal(ks[12], (Ck,), jnp.float32),
        "k_var": 0.5 + jax.random.uniform(ks[13], (Ck,), jnp.float32),
        "wo": jax.random.normal(ks[14], (Cout, Cv), jnp.float32) * 0.1,
    }
    x = jax.random.normal(ks[15], (B, Cin, H, W2), jnp.float32)

    out = jax.block_until_ready(pam_forward(x, params))
    ref = jax.block_until_ready(pam_reference(x, params))

    assert out.shape == (B, Cout, H, W2), out.shape
    err = jnp.max(jnp.abs(out - ref))
    # bf16 matmul operands (f32 accumulation): tolerance reflects bf16 rounding.
    assert err < 5e-2, f"max abs err {err}"
    print("KERNEL_OK")
</pallas_src>

<mosaic_0001>
module attributes {stable_mosaic.version = 11 : i64} {
  func.func @_pam_kernel(%arg0: i32, %arg1: memref<1x48x256xbf16, #tpu.memory_space<vmem>>, %arg2: memref<96x48xbf16, #tpu.memory_space<vmem>>, %arg3: memref<1x32x256xf32, #tpu.memory_space<vmem>>) attributes {dimension_semantics = [#tpu.dimension_semantics<parallel>], iteration_bounds = array<i64: 2>, scalar_prefetch = 0 : i64, scratch_operands = 0 : i64, tpu.core_type = #tpu.core_type<tc>, window_params = [{transform_indices = @transform_0, window_bounds = array<i64: 1, 48, 256>}, {pipeline_mode = #tpu.pipeline_mode<synchronous>, transform_indices = @transform_1, window_bounds = array<i64: 96, 48>}, {transform_indices = @transform_2, window_bounds = array<i64: 1, 32, 256>}]} {
    %c0 = arith.constant 0 : index
    %c0_0 = arith.constant 0 : index
    %c0_1 = arith.constant 0 : index
    %0 = vector.load %arg1[%c0, %c0_0, %c0_1] : memref<1x48x256xbf16, #tpu.memory_space<vmem>>, vector<1x48x256xbf16>
    %1 = vector.shape_cast %0 : vector<1x48x256xbf16> to vector<48x256xbf16>
    %c0_2 = arith.constant 0 : index
    %c0_3 = arith.constant 0 : index
    %2 = vector.load %arg2[%c0_2, %c0_3] : memref<96x48xbf16, #tpu.memory_space<vmem>>, vector<96x48xbf16>
    %cst = arith.constant dense<0.000000e+00> : vector<96x256xf32>
    %3 = tpu.matmul %2, %1, %cst {dimension_numbers = #tpu.dot_dimension_numbers<[1], [0], [0], [1], [0, 0, 1, 1], [], []>} : vector<96x48xbf16>, vector<48x256xbf16>, vector<96x256xf32> -> vector<96x256xf32>
    %4 = arith.truncf %3 : vector<96x256xf32> to vector<96x256xbf16>
    %5 = vector.extract_strided_slice %4 {offsets = [0, 0], sizes = [48, 256], strides = [1, 1]} : vector<96x256xbf16> to vector<48x256xbf16>
    %cst_4 = arith.constant dense<0.000000e+00> : vector<256x256xf32>
    %6 = tpu.matmul %1, %5, %cst_4 {dimension_numbers = #tpu.dot_dimension_numbers<[0], [0], [1], [1], [0, 1, 1, 1], [], []>} : vector<48x256xbf16>, vector<48x256xbf16>, vector<256x256xf32> -> vector<256x256xf32>
    %cst_5 = arith.constant dense<0xFF800000> : vector<256xf32>
    %7 = vector.multi_reduction <maximumf>, %6, %cst_5 [1] : vector<256x256xf32> to vector<256xf32>
    %8 = vector.shape_cast %7 : vector<256xf32> to vector<256x1xf32>
    %9 = vector.broadcast %8 : vector<256x1xf32> to vector<256x256xf32>
    %10 = arith.subf %6, %9 : vector<256x256xf32>
    %11 = math.exp %10 : vector<256x256xf32>
    %12 = arith.truncf %11 : vector<256x256xf32> to vector<256x256xbf16>
    %13 = vector.extract_strided_slice %4 {offsets = [48, 0], sizes = [48, 256], strides = [1, 1]} : vector<96x256xbf16> to vector<48x256xbf16>
    %cst_6 = arith.constant dense<0.000000e+00> : vector<48x256xf32>
    %14 = tpu.matmul %13, %12, %cst_6 {dimension_numbers = #tpu.dot_dimension_numbers<[1], [1], [0], [0], [0, 0, 1, 0], [], []>} : vector<48x256xbf16>, vector<256x256xbf16>, vector<48x256xf32> -> vector<48x256xf32>
    %15 = vector.extract_strided_slice %14 {offsets = [0, 0], sizes = [32, 256], strides = [1, 1]} : vector<48x256xf32> to vector<32x256xf32>
    %16 = vector.extract_strided_slice %14 {offsets = [32, 0], sizes = [1, 256], strides = [1, 1]} : vector<48x256xf32> to vector<1x256xf32>
    %17 = tpu.reciprocal %16 {approx = true} : vector<1x256xf32> -> vector<1x256xf32>
    %18 = vector.broadcast %17 : vector<1x256xf32> to vector<32x256xf32>
    %19 = arith.mulf %15, %18 : vector<32x256xf32>
    %c0_7 = arith.constant 0 : index
    %c0_8 = arith.constant 0 : index
    %c0_9 = arith.constant 0 : index
    %20 = vector.load %arg3[%c0_7, %c0_8, %c0_9] : memref<1x32x256xf32, #tpu.memory_space<vmem>>, vector<1x32x256xf32>
    %21 = vector.shape_cast %20 : vector<1x32x256xf32> to vector<32x256xf32>
    %22 = vector.shape_cast %19 : vector<32x256xf32> to vector<1x32x256xf32>
    tpu.vector_store %arg3[%c0_7, %c0_8, %c0_9], %22 {strides = array<i32>} : memref<1x32x256xf32, #tpu.memory_space<vmem>>, vector<1x32x256xf32>,
    return
  }
  func.func @transform_0(%arg0: i32) -> (i32, i32, i32) {
    %c0_i32 = arith.constant 0 : i32
    %c0_i32_0 = arith.constant 0 : i32
    %c0_i32_1 = arith.constant 0 : i32
    return %arg0, %c0_i32, %c0_i32_0 : i32, i32, i32
  }
  func.func @transform_1(%arg0: i32) -> (i32, i32) {
    %c0_i32 = arith.constant 0 : i32
    %c0_i32_0 = arith.constant 0 : i32
    %c0_i32_1 = arith.constant 0 : i32
    return %c0_i32, %c0_i32_0 : i32, i32
  }
  func.func @transform_2(%arg0: i32) -> (i32, i32, i32) {
    %c0_i32 = arith.constant 0 : i32
    %c0_i32_0 = arith.constant 0 : i32
    %c0_i32_1 = arith.constant 0 : i32
    return %arg0, %c0_i32, %c0_i32_0 : i32, i32, i32
  }
}

</mosaic_0001>

<bundles_post_ra>
// kernel: tpu_custom_call.1
= control target key start
LH: loop header
LB: loop body
LE: loop exit
PB: predicated region body
PF: predicated region fallthrough
CT: control target
= control target key end

     0   :  { %7 = vsyncpa [#allocation3], 0  ;;  %s2077_s0 = inlined_call_operand.hbm [shape: bf16[2,48,256], index: 0, kind: input, shape index: {}]   ;;  %s2078_s1 = inlined_call_operand.vmem [shape: bf16[96,48], index: 1, kind: input, shape index: {}]   ;;  %s2079_s2 = inlined_call_operand.hbm [shape: f32[2,32,256], index: 2, kind: output, shape index: {}]  }
   0x1   :  { %9 = vsyncpa [#allocation3 + $0x1], 0 }
   0x2   :  { %10 = vsyncpa [#allocation4], 0 }
   0x3   :  { %12 = vsyncpa [#allocation4 + $0x1], 0  ;;  %s1602_s9 = smov 0   ;;  %s1604_s10 = smov 0  }
   0x4   :  { %s1606_s11 = smov 0   ;;  %s1608_s12 = smov 0  }
   0x5 LB: > { %s1623_s13 = sadd.s32 4294967295, %s1581_s12   ;;  %s1183_s14 = sadd.s32 4294967294, %s1581_s12   ;;  %s1581_s12 = sphi %s1608_s12, %s2126_s12   ;;  %s1577_s11 = sphi %s1606_s11, %s2125_s11   ;;  %s1573_s10 = sphi %s1604_s10, %s2124_s10   ;;  %s1569_s9 = sphi %s1602_s9, %s2123_s9  }
   0x6   : > { %s1627_s15 = sadd.s32 1, %s1581_s12   ;;  %s25_s16 = sadd.s32 1, %s1577_s11 }
   0x7   : > { %s22_s17 = ssub.s32 %s1581_s12, %s1627_s15  ;;  %p32_p0 = scmp.ne.s32.totalorder %s1577_s11, %s1573_s10 }
   0x8   : > { %p23_p1 = scmp.eq.s32.totalorder %s22_s17, 0  ;;  %p33_p2 = scmp.eq.s32.totalorder %s1581_s12, 0 }
   0x9   : > { %p38_p3 = scmp.ne.s32.totalorder %s1573_s10, %s1569_s9  ;;  %p39_p4 = scmp.eq.s32.totalorder %s1623_s13, 0 }
   0xa   : > { %s1639_s18 = scalar_select %p23_p1, %s1577_s11, %s25_s16  }
   0xb   : > { %p34_p5 = por %p33_p2, %p32_p0  ;;  %p1641_p6 = por %p39_p4, %p38_p3 }
   0xc   : > { %p83_p7 = scmp.eq.s32.totalorder %s1623_s13, 1  ;;  %p89_p8 = scmp.eq.s32.totalorder %s1183_s14, 1 }
   0xd   : > { %p1185_p9 = scmp.ge.s32.totalorder %s1581_s12, 2  ;;  %p1314_p10 = scmp.lt.s32.totalorder %s1581_s12, 2 }
   0xe   : > { %p1648_p11 = por %p83_p7, %p32_p0  ;;  %p1652_p12 = por %p89_p8, %p38_p3 }
   0xf   : > { %s112_s22 = sand.u32 1, %s1577_s11   ;;  %s1300_s23 = smul.u32 48, %s1581_s12 }
  0x10   : > { %s1299_s24 = smul.u32 48, %s112_s22  ;;  %p1661_p13 = pnand %p1314_p10, %p34_p5 }
  0x11   : > { %s121_s27 = scalar_lea.hbm %s2077_s0, %s1300_s23  ;;  %s113_s4 = scalar_lea.sflag [#allocation3], %s112_s22 }
  0x12   : > { %s122_s29 = sshll.u32 %s121_s27, 4  ;;  %s116_s30 = scalar_lea.vmem [#allocation2], %s1299_s24  ;;  %s123_s29 = int_to_ptr.hbm [resolvable:$true] %s122_s29 }
  0x13   : > { %s124_s3 = sshll.u32 %s116_s30, 4  ;;  %s1485_s5 = sshra.s32 %s123_s29, 4  ;;  %s125_s3 = int_to_ptr.vmem [resolvable:$true] %s124_s3  ;;  %s1486_s5 = int_to_ptr.hbm [resolvable:$true] %s1485_s5 }
  0x14   : > { %s1487_s6 = scalar_lea.hbm %s1486_s5, 48  ;;  %p1489_p1 = pneg %p1661_p13 }
  0x15   : > { %p1488_p0 = scmp.ne.s32.totalorder %s1486_s5, %s1487_s6  ;;  %s1492_s14 = scalar_lea.hbm %s2077_s0, 96 }
  0x16   : > { %p1493_p4 = scmp.lt.s32.totalorder %s1486_s5, %s2077_s0  ;;  %p1494_p5 = scmp.lt.s32.totalorder %s1492_s14, %s1487_s6 }
  0x17   : > { %p1490_p2 = pnand %p1489_p1, %p1488_p0 }
  0x18   : > { %p1495_p7 = por %p1494_p5, %p1493_p4 }
  0x19   : > { %p1491_p3 = pneg %p1490_p2 }
  0x1b   : > { %p1496_p8 = pnand %p1495_p7, %p1491_p3 }
  0x1d   : > { %1499 = shalt.err (!%p1496_p8)
}
  0x1e   : > { %s1583_s22 = smov 128   ;;  %s1584_s23 = smov 8  }
  0x1f   : > { %1309 = dma.hbm_to_vmem [thread:$0]  (!%p1661_p13), %s123_s29, 768, %s125_s3, %s113_s4, %s1583_s22, %s1583_s22, %s1584_s23  }
  0x20   : > { %p1187_p10 = scmp.ge.s32.totalorder %s1581_s12, 1  ;;  %p132_p0 = scmp.lt.s32.totalorder %s1581_s12, 3 }
  0x22   : > { %p133_p1 = pnand %p1187_p10, %p132_p0 }
  0x24   : > { %136 = sbr.rel (%p133_p1) target bundleno = 997 (0x3e5), region = 28 }
  0x29   : > { %s1678_s24 = sand.u32 1, %s1573_s10  }
  0x2a   : > { %s1301_s25 = smul.u32 48, %s1678_s24  ;;  %s139_s26 = scalar_lea.sflag [#allocation3], %s1678_s24 }
  0x2c   : > { %s142_s27 = scalar_lea.vmem [#allocation2], %s1301_s25 }
  0x2d   : > { %1560 = dma.done.wait (%p1641_p6), %s139_s26, 768  }
  0x2e   : > { %1562 = vsyncadd (%p1641_p6), %s139_s26, 4294966528  ;;  %v1231_v0 = vld [vmem:[%s142_s27 + $0x20] sm:$0xf]  ;;  %v1291_v1 = vld [vmem:[%s142_s27 + $0x24] sm:$0xf0]  ;;  %vm243_vm0 = vcmask 392192  }
  0x2f   : > { %v1290_v2 = vld [vmem:[%s142_s27 + $0x24] sm:$0xf]  ;;  %v1232_v3 = vor.u32 %v1291_v1, %v1231_v0  ;;  %v1233_v4 = vld [vmem:[%s142_s27 + $0x28] sm:$0xf0]  ;;  %v1223_v5 = vld [vmem:[%s142_s27 + $0x10] sm:$0xf] }
  0x30   : > { %v1289_v6 = vld [vmem:[%s142_s27 + $0x14] sm:$0xf0]  ;;  %v1236_v7 = vor.u32 %v1290_v2, %v1233_v4  ;;  %v1288_v8 = vld [vmem:[%s142_s27 + $0x14] sm:$0xf]  ;;  %v1225_v9 = vld [vmem:[%s142_s27 + $0x18] sm:$0xf0] }
  0x31   : > { %v1215_v10 = vld [vmem:[%s142_s27] sm:$0xf]  ;;  %267 = vmatpush.bf16.msra.mxu0 %v1232_v3  ;;  %v1224_v11 = vor.u32 %v1289_v6, %v1223_v5  ;;  %v1287_v12 = vld [vmem:[%s142_s27 + $0x4] sm:$0xf0]  ;;  %v1286_v13 = vld [vmem:[%s142_s27 + $0x4] sm:$0xf]  ;;  %v1228_v15 = vor.u32 %v1288_v8, %v1225_v9 }
  0x32   : > { %v1217_v14 = vld [vmem:[%s142_s27 + $0x8] sm:$0xf0]  ;;  %306 = vmatpush.bf16.msra.mxu1 %v1236_v7  ;;  %v1216_v16 = vor.u32 %v1287_v12, %v1215_v10  ;;  %v1292_v18 = vld [vmem:[%s2078_s1] sm:$0xff]  ;;  %v1294_v20 = vld [vmem:[%s2078_s1 + $0x10] sm:$0xff]  ;;  %s1188_s17 = sshll.u32 %s1678_s24, 6  ;;  %s1298_s23 = sshll.u32 %s1623_s13, 6 }
  0x33   : > { %v1220_v17 = vor.u32 %v1286_v13, %v1217_v14  ;;  %v1293_v19 = vld [vmem:[%s2078_s1 + $0x8] sm:$0xff]  ;;  %s2033_s22 = scalar_lea.vmem [#allocation5], %s1188_s17  ;;  %s1106_s27 = scalar_lea.hbm %s2079_s2, %s1298_s23 }
  0x34   : > { %s1107_s19 = sshll.u32 %s2033_s22, 4  ;;  %s1109_s28 = sshll.u32 %s1106_s27, 4  ;;  %s1108_s19 = int_to_ptr.vmem [resolvable:$true] %s1107_s19  ;;  %s1110_s28 = int_to_ptr.hbm [resolvable:$true] %s1109_s28 }
  0x35   : > { %352 = vxpose.binary.xlu0.c.b16.start [1/6] (short) %v1220_v17, %v1216_v16, 128  ;;  %s1095_s13 = scalar_lea.sflag [#allocation4], %s1678_s24  ;;  %s1529_s29 = sshra.s32 %s1110_s28, 4  ;;  %s1530_s29 = int_to_ptr.hbm [resolvable:$true] %s1529_s29 }
  0x36   : > { %268 = vmatpush.bf16.msra.mxu0 %v1224_v11  ;;  %307 = vmatpush.bf16.msra.mxu1 %v1228_v15  ;;  %s1531_s30 = scalar_lea.hbm %s1530_s29, 64  ;;  %s1535_s5 = scalar_lea.hbm %s2079_s2, 128 }
  0x37   : > { %p1532_p6 = scmp.ne.s32.totalorder %s1530_s29, %s1531_s30  ;;  %p1536_p3 = scmp.lt.s32.totalorder %s1530_s29, %s2079_s2 }
  0x38   : > { %p1537_p4 = scmp.lt.s32.totalorder %s1535_s5, %s1531_s30 }
  0x39   : > { %p1533_p13 = pnand %p1532_p6, %p1648_p11 }
  0x3a   : > { %269 = vmatpush.bf16.msra.mxu0 %v1216_v16  ;;  %308 = vmatpush.bf16.msra.mxu1 %v1220_v17  ;;  %p1538_p5 = por %p1537_p4, %p1536_p3 }
  0x3b   : > { %p1534_p2 = pneg %p1533_p13 }
  0x3d   : > { %1237 = vmatmul.msk.bf16.vlgmr.msra.gmra.mxu0 %vm243_vm0, %v1292_v18  ;;  %1243 = vmatmul.msk.bf16.vlgmr.msra.gmra.mxu1 %vm243_vm0, %v1292_v18  ;;  %p1539_p7 = pnand %p1538_p5, %p1534_p2 }
  0x45   : > { %353 = vxpose.binary.xlu0.c.b16.cont [2/6] (short) %v1228_v15, %v1224_v11, 128 }
  0x4d   : > { %1238 = vmatmul.msk.bf16.gmra.mxu0 %vm243_vm0, %v1293_v19  ;;  %1244 = vmatmul.msk.bf16.gmra.mxu1 %vm243_vm0, %v1293_v19 }
  0x55   : > { %354 = vxpose.binary.xlu0.c.b16.end [3/6] (short) %v1236_v7, %v1232_v3, 128 }
  0x5d   : > { %1239 = vmatmul.msk.bf16.gmra.mxu0 %vm243_vm0, %v1294_v20  ;;  %1245 = vmatmul.msk.bf16.gmra.mxu1 %vm243_vm0, %v1294_v20 }
  0xba   : > { %v271_v21 = vpop.f32.mrf.mxu0  ;;  %v310_v22 = vpop.f32.mrf.mxu1 }
  0xbb   : > { %v340_v48 = vpack.c.bf16 %v310_v22, %v271_v21 }
  0xbd   : > { %v382_v55 = vunpack.c.l.b16 %v340_v48  ;;  %v383_v56 = vunpack.c.h.b16 %v340_v48 }
  0xc2   : > { %v273_v23 = vpop.f32.mrf.mxu0  ;;  %v312_v24 = vpop.f32.mrf.mxu1 }
  0xc3   : > { %v341_v42 = vpack.c.bf16 %v312_v24, %v273_v23 }
  0xc5   : > { %v384_v51 = vunpack.c.l.b16 %v341_v42  ;;  %v385_v52 = vunpack.c.h.b16 %v341_v42 }
  0xc7   : > { %v394_v57 = vpack.c.b16 %v384_v51, %v382_v55  ;;  %v395_v58 = vpack.c.b16 %v385_v52, %v383_v56 }
  0xca   : > { %v276_v25 = vpop.f32.mrf.mxu0  ;;  %v315_v26 = vpop.f32.mrf.mxu1 }
  0xcb   : > { %v342_v37 = vpack.c.bf16 %v315_v26, %v276_v25 }
  0xcd   : > { %v386_v49 = vunpack.c.l.b16 %v342_v37  ;;  %v387_v50 = vunpack.c.h.b16 %v342_v37 }
  0xd2   : > { %v278_v27 = vpop.f32.mrf.mxu0  ;;  %v317_v28 = vpop.f32.mrf.mxu1 }
  0xd3   : > { %v343_v35 = vpack.c.bf16 %v317_v28, %v278_v27 }
  0xd5   : > { %v388_v43 = vunpack.c.l.b16 %v343_v35  ;;  %v389_v44 = vunpack.c.h.b16 %v343_v35 }
  0xd7   : > { %v396_v53 = vpack.c.b16 %v388_v43, %v386_v49  ;;  %v397_v54 = vpack.c.b16 %v389_v44, %v387_v50 }
  0xda   : > { %v281_v29 = vpop.f32.mrf.mxu0  ;;  %v320_v30 = vpop.f32.mrf.mxu1 }
  0xdb   : > { %v344_v32 = vpack.c.bf16 %v320_v30, %v281_v29 }
  0xdd   : > { %v390_v38 = vunpack.c.l.b16 %v344_v32  ;;  %v391_v40 = vunpack.c.h.b16 %v344_v32 }
  0xe1   : > { %v360_v31 = vpop.trf.xlu0 }
  0xe2   : > { %v283_v33 = vpop.f32.mrf.mxu0  ;;  %v322_v34 = vpop.f32.mrf.mxu1 }
  0xe3   : > { %v345_v36 = vpack.c.bf16 %v322_v34, %v283_v33 }
  0xe5   : > { %v392_v39 = vunpack.c.l.b16 %v345_v36  ;;  %v393_v41 = vunpack.c.h.b16 %v345_v36 }
  0xe7   : > { %v398_v45 = vpack.c.b16 %v392_v39, %v390_v38  ;;  %v399_v46 = vpack.c.b16 %v393_v41, %v391_v40 }
  0xe9   : > { %v361_v47 = vpop.trf.xlu0  ;;  %459 = vmatpush.bf16.msra.mxu2 %v398_v45  ;;  %548 = vmatpush.bf16.msra.mxu3 %v399_v46 }
  0xed   : > { %460 = vmatpush.bf16.msra.mxu2 %v396_v53  ;;  %549 = vmatpush.bf16.msra.mxu3 %v397_v54 }
  0xf1   : > { %v362_v59 = vpop.trf.xlu0  ;;  %461 = vmatpush.bf16.msra.mxu2 %v394_v57  ;;  %550 = vmatpush.bf16.msra.mxu3 %v395_v58 }
  0xf4   : > { %1249 = vmatmul.msk.bf16.vlgmr.msra.gmra.mxu2 %vm243_vm0, %v360_v31  ;;  %1265 = vmatmul.msk.bf16.vlgmr.msra.gmra.mxu3 %vm243_vm0, %v360_v31 }
  0xf9   : > { %v363_v60 = vpop.trf.xlu0 }
 0x101   : > { %v364_v61 = vpop.trf.xlu0 }
 0x104   : > { %1250 = vmatmul.msk.bf16.gmra.mxu2 %vm243_vm0, %v362_v59  ;;  %1266 = vmatmul.msk.bf16.gmra.mxu3 %vm243_vm0, %v362_v59 }
 0x109   : > { %v365_v62 = vpop.trf.xlu0 }
 0x111   : > { %v366_v63 = vpop.trf.xlu0 }
 0x114   : > { %1251 = vmatmul.msk.bf16.gmra.mxu2 %vm243_vm0, %v364_v61  ;;  %1267 = vmatmul.msk.bf16.gmra.mxu3 %vm243_vm0, %v364_v61 }
 0x119   : > { %v367_v0 = vpop.trf.xlu0 }
 0x121   : > { %v368_v1 = vpop.trf.xlu0 }
 0x124   : > { %1252 = vmatmul.msk.bf16.gmra.mxu2 %vm243_vm0, %v366_v63  ;;  %1268 = vmatmul.msk.bf16.gmra.mxu3 %vm243_vm0, %v366_v63 }
 0x129   : > { %v369_v2 = vpop.trf.xlu0 }
 0x131   : > { %v370_v3 = vpop.trf.xlu0 }
 0x134   : > { %1253 = vmatmul.msk.bf16.gmra.mxu2 %vm243_vm0, %v368_v1  ;;  %1269 = vmatmul.msk.bf16.gmra.mxu3 %vm243_vm0, %v368_v1 }
 0x139   : > { %v371_v4 = vpop.trf.xlu0 }
 0x141   : > { %v372_v5 = vpop.trf.xlu0 }
 0x144   : > { %1254 = vmatmul.msk.bf16.gmra.mxu2 %vm243_vm0, %v370_v3  ;;  %1270 = vmatmul.msk.bf16.gmra.mxu3 %vm243_vm0, %v370_v3 }
 0x149   : > { %v373_v6 = vpop.trf.xlu0 }
 0x151   : > { %v374_v7 = vpop.trf.xlu0 }
 0x154   : > { %1255 = vmatmul.msk.bf16.gmra.mxu2 %vm243_vm0, %v372_v5  ;;  %1271 = vmatmul.msk.bf16.gmra.mxu3 %vm243_vm0, %v372_v5  ;;  %v1295_v5 = vld [vmem:[%s2078_s1 + $0x18] sm:$0xff] }
 0x155   : > { %1240 = vmatmul.msk.bf16.gmra.mxu0 %vm243_vm0, %v1295_v5  ;;  %1246 = vmatmul.msk.bf16.gmra.mxu1 %vm243_vm0, %v1295_v5 }
 0x159   : > { %v375_v41 = vpop.trf.xlu0 }
 0x164   : > { %1256 = vmatmul.msk.bf16.gmra.mxu2 %vm243_vm0, %v374_v7  ;;  %1272 = vmatmul.msk.bf16.gmra.mxu3 %vm243_vm0, %v374_v7 }
 0x174   : > { %1257 = vmatmul.msk.bf16.gmra.mxu2 %vm243_vm0, %v361_v47  ;;  %1273 = vmatmul.msk.bf16.gmra.mxu3 %vm243_vm0, %v361_v47 }
 0x177   : > { %v1719_v8 = vpop.f32.mrf.mxu2  ;;  %v1721_v9 = vpop.f32.mrf.mxu3 }
 0x178   : > { %2097 = vst [vmem:[#allocation8_spill] sm:$0xff] %v1719_v8  ;;  %v632_v56 = vmax.f32 %v1719_v8, %v1721_v9 }
 0x179   : > { %2098 = vst [vmem:[#allocation9_spill] sm:$0xff] %v1721_v9 }
 0x17f   : > { %v1723_v10 = vpop.f32.mrf.mxu2  ;;  %v1725_v11 = vpop.f32.mrf.mxu3 }
 0x180   : > { %2099 = vst [vmem:[#allocation10_spill] sm:$0xff] %v1723_v10 }
 0x181   : > { %2100 = vst [vmem:[#allocation11_spill] sm:$0xff] %v1725_v11 }
 0x184   : > { %1258 = vmatmul.msk.bf16.gmra.mxu2 %vm243_vm0, %v363_v60  ;;  %1274 = vmatmul.msk.bf16.gmra.mxu3 %vm243_vm0, %v363_v60 }
 0x187   : > { %v1729_v12 = vpop.f32.mrf.mxu2  ;;  %v1731_v13 = vpop.f32.mrf.mxu3 }
 0x188   : > { %v638_v52 = vmax.f32 %v1729_v12, %v1731_v13 }
 0x18f   : > { %v1733_v14 = vpop.f32.mrf.mxu2  ;;  %v1735_v15 = vpop.f32.mrf.mxu3 }
 0x190   : > { %v641_v63 = vmax.f32 %v1733_v14, %v1735_v15 }
 0x194   : > { %1259 = vmatmul.msk.bf16.gmra.mxu2 %vm243_vm0, %v365_v62  ;;  %1275 = vmatmul.msk.bf16.gmra.mxu3 %vm243_vm0, %v365_v62 }
 0x197   : > { %v1739_v16 = vpop.f32.mrf.mxu2  ;;  %v1741_v17 = vpop.f32.mrf.mxu3 }
 0x198   : > { %v644_v18 = vmax.f32 %v1739_v16, %v1741_v17 }
 0x19a   : > { %645 = vmax.xlane.f32.xlu0 %v644_v18 }
 0x19f   : > { %v1745_v19 = vpop.f32.mrf.mxu2  ;;  %v1747_v20 = vpop.f32.mrf.mxu3 }
 0x1a0   : > { %v647_v60 = vmax.f32 %v1745_v19, %v1747_v20 }
 0x1a4   : > { %1260 = vmatmul.msk.bf16.gmra.mxu2 %vm243_vm0, %v367_v0  ;;  %1276 = vmatmul.msk.bf16.gmra.mxu3 %vm243_vm0, %v367_v0 }
 0x1a7   : > { %v1751_v21 = vpop.f32.mrf.mxu2  ;;  %v1753_v22 = vpop.f32.mrf.mxu3 }
 0x1a8   : > { %v650_v57 = vmax.f32 %v1751_v21, %v1753_v22 }
 0x1af   : > { %v1755_v23 = vpop.f32.mrf.mxu2  ;;  %v1757_v24 = vpop.f32.mrf.mxu3 }
 0x1b0   : > { %v653_v48 = vmax.f32 %v1755_v23, %v1757_v24 }
 0x1b4   : > { %1261 = vmatmul.msk.bf16.gmra.mxu2 %vm243_vm0, %v369_v2  ;;  %1277 = vmatmul.msk.bf16.gmra.mxu3 %vm243_vm0, %v369_v2  ;;  %v635_v2 = vmax.f32 %v1723_v10, %v1725_v11 }
 0x1b7   : > { %v1761_v25 = vpop.f32.mrf.mxu2  ;;  %v1763_v26 = vpop.f32.mrf.mxu3 }
 0x1b8   : > { %v656_v53 = vmax.f32 %v1761_v25, %v1763_v26 }
 0x1bf   : > { %v1765_v27 = vpop.f32.mrf.mxu2  ;;  %v1767_v28 = vpop.f32.mrf.mxu3 }
 0x1c0   : > { %v659_v44 = vmax.f32 %v1765_v27, %v1767_v28 }
 0x1c4   : > { %1262 = vmatmul.msk.bf16.gmra.mxu2 %vm243_vm0, %v371_v4  ;;  %1278 = vmatmul.msk.bf16.gmra.mxu3 %vm243_vm0, %v371_v4 }
 0x1c7   : > { %v1771_v29 = vpop.f32.mrf.mxu2  ;;  %v1773_v30 = vpop.f32.mrf.mxu3 }
 0x1c8   : > { %v662_v31 = vmax.f32 %v1771_v29, %v1773_v30 }
 0x1ca   : > { %663 = vmax.xlane.f32.xlu1 %v662_v31 }
 0x1cf   : > { %v1777_v32 = vpop.f32.mrf.mxu2  ;;  %v1779_v33 = vpop.f32.mrf.mxu3 }
 0x1d0   : > { %v665_v34 = vmax.f32 %v1777_v32, %v1779_v33 }
 0x1d2   : > { %666 = vmax.xlane.f32.xlu2 %v665_v34  ;;  %v1296_v34 = vld [vmem:[%s2078_s1 + $0x20] sm:$0xff] }
 0x1d3   : > { %1241 = vmatmul.msk.bf16.gmra.mxu0 %vm243_vm0, %v1296_v34  ;;  %1247 = vmatmul.msk.bf16.gmra.mxu1 %vm243_vm0, %v1296_v34 }
 0x1d4   : > { %1263 = vmatmul.msk.bf16.gmra.mxu2 %vm243_vm0, %v373_v6  ;;  %1279 = vmatmul.msk.bf16.gmra.mxu3 %vm243_vm0, %v373_v6 }
 0x1d7   : > { %v1785_v35 = vpop.f32.mrf.mxu2  ;;  %v1787_v36 = vpop.f32.mrf.mxu3 }
 0x1d8   : > { %v668_v37 = vmax.f32 %v1785_v35, %v1787_v36 }
 0x1da   : > { %669 = vmax.xlane.f32.xlu2 %v668_v37 }
 0x1df   : > { %v1791_v38 = vpop.f32.mrf.mxu2  ;;  %v1793_v39 = vpop.f32.mrf.mxu3 }
 0x1e0   : > { %v671_v40 = vmax.f32 %v1791_v38, %v1793_v39 }
 0x1e2   : > { %672 = vmax.xlane.f32.xlu2 %v671_v40 }
 0x1e4   : > { %1264 = vmatmul.msk.bf16.gmra.mxu2 %vm243_vm0, %v375_v41  ;;  %1280 = vmatmul.msk.bf16.gmra.mxu3 %vm243_vm0, %v375_v41 }
 0x1e7   : > { %v1799_v42 = vpop.f32.mrf.mxu2  ;;  %v1801_v43 = vpop.f32.mrf.mxu3 }
 0x1e8   : > { %v674_v45 = vmax.f32 %v1799_v42, %v1801_v43 }
 0x1ea   : > { %660 = vmax.xlane.f32.xlu2 %v659_v44  ;;  %675 = vmax.xlane.f32.xlu1 %v674_v45  ;;  %v1297_v45 = vld [vmem:[%s2078_s1 + $0x28] sm:$0xff] }
 0x1eb   : > { %1242 = vmatmul.msk.bf16.gmra.mxu0 %vm243_vm0, %v1297_v45  ;;  %1248 = vmatmul.msk.bf16.gmra.mxu1 %vm243_vm0, %v1297_v45 }
 0x1ef   : > { %v1807_v46 = vpop.f32.mrf.mxu2  ;;  %v1809_v47 = vpop.f32.mrf.mxu3 }
 0x1f0   : > { %v677_v49 = vmax.f32 %v1807_v46, %v1809_v47 }
 0x1f2   : > { %654 = vmax.xlane.f32.xlu2 %v653_v48  ;;  %678 = vmax.xlane.f32.xlu1 %v677_v49 }
 0x1f7   : > { %v1815_v50 = vpop.f32.mrf.mxu2  ;;  %v1817_v51 = vpop.f32.mrf.mxu3 }
 0x1f8   : > { %2101 = vst [vmem:[#allocation12_spill] sm:$0xff] %v1815_v50 }
 0x1f9   : > { %2102 = vst [vmem:[#allocation13_spill] sm:$0xff] %v1817_v51 }
 0x1fa   : > { %639 = vmax.xlane.f32.xlu2 %v638_v52  ;;  %657 = vmax.xlane.f32.xlu1 %v656_v53 }
 0x1ff   : > { %v1823_v54 = vpop.f32.mrf.mxu2  ;;  %v1825_v55 = vpop.f32.mrf.mxu3 }
 0x200   : > { %2103 = vst [vmem:[#allocation14_spill] sm:$0xff] %v1823_v54 }
 0x201   : > { %2104 = vst [vmem:[#allocation15_spill] sm:$0xff] %v1825_v55 }
 0x202   : > { %633 = vmax.xlane.f32.xlu2 %v632_v56  ;;  %651 = vmax.xlane.f32.xlu1 %v650_v57 }
 0x207   : > { %v1831_v58 = vpop.f32.mrf.mxu2  ;;  %v1833_v59 = vpop.f32.mrf.mxu3 }
 0x208   : > { %2105 = vst [vmem:[#allocation16_spill] sm:$0xff] %v1831_v58 }
 0x20a   : > { %648 = vmax.xlane.f32.xlu1 %v647_v60 }
 0x20f   : > { %v1837_v61 = vpop.f32.mrf.mxu2  ;;  %v1839_v62 = vpop.f32.mrf.mxu3 }
 0x210   : > { %2106 = vst [vmem:[#allocation17_spill] sm:$0xff] %v1837_v61 }
 0x211   : > { %2107 = vst [vmem:[#allocation18_spill] sm:$0xff] %v1839_v62 }
 0x212   : > { %642 = vmax.xlane.f32.xlu1 %v641_v63 }
 0x217   : > { %v1843_v0 = vpop.f32.mrf.mxu2  ;;  %v1845_v1 = vpop.f32.mrf.mxu3 }
 0x21a   : > { %636 = vmax.xlane.f32.xlu1 %v635_v2 }
 0x21f   : > { %v1849_v3 = vpop.f32.mrf.mxu2  ;;  %v1851_v4 = vpop.f32.mrf.mxu3 }
 0x220   : > { %2108 = vst [vmem:[#allocation19_spill] sm:$0xff] %v1849_v3 }
 0x221   : > { %2109 = vst [vmem:[#allocation20_spill] sm:$0xff] %v1851_v4 }
 0x227   : > { %v1858_v6 = vpop.f32.mrf.mxu2  ;;  %v1860_v7 = vpop.f32.mrf.mxu3 }
 0x22f   : > { %v1862_v18 = vpop.f32.mrf.mxu2  ;;  %v1864_v31 = vpop.f32.mrf.mxu3 }
 0x237   : > { %v1871_v37 = vpop.f32.mrf.mxu2  ;;  %v1873_v40 = vpop.f32.mrf.mxu3 }
 0x23d   : > { %v1892_v57 = vpop.xlane.xlu1 %663 }
 0x23f   : > { %v1875_v41 = vpop.f32.mrf.mxu2  ;;  %v1877_v44 = vpop.f32.mrf.mxu3 }
 0x245   : > { %v667_v56 = vpop.xlane.xlu2 %666 }
 0x247   : > { %v1882_v48 = vpop.f32.mrf.mxu2  ;;  %v1884_v49 = vpop.f32.mrf.mxu3 }
 0x24d   : > { %v670_v2 = vpop.xlane.xlu2 %669 }
 0x24f   : > { %v1888_v52 = vpop.f32.mrf.mxu2  ;;  %v1890_v53 = vpop.f32.mrf.mxu3 }
 0x255   : > { %v673_v62 = vpop.xlane.xlu2 %672 }
 0x257   : > { %v1894_v60 = vpop.f32.mrf.mxu2  ;;  %v1896_v63 = vpop.f32.mrf.mxu3 }
 0x25d   : > { %v676_v5 = vpop.xlane.xlu1 %675 }
 0x25e   : > { %v756_v55 = vsub.f32 %v1799_v42, %v676_v5  ;;  %v757_v45 = vsub.f32 %v1801_v43, %v676_v5  ;;  %v754_v42 = vsub.f32 %v1791_v38, %v673_v62  ;;  %v755_v43 = vsub.f32 %v1793_v39, %v673_v62 }
 0x25f   : > { %v1898_v34 = vpop.f32.mrf.mxu2  ;;  %v1900_v54 = vpop.f32.mrf.mxu3 }
 0x260   : > { %v848_v50 = vmul.f32 1.442695, %v756_v55  ;;  %v850_v8 = vmul.f32 1.442695, %v757_v45  ;;  %v844_v55 = vmul.f32 1.442695, %v754_v42 }
 0x262   : > { %1353 = vpow2.f32 %v848_v50 }
 0x263   : > { %1355 = vpow2.f32 %v850_v8  ;;  %v716_v8 = vmax.f32 %v1894_v60, %v1896_v63 }
 0x265   : > { %v679_v61 = vpop.xlane.xlu1 %678 }
 0x266   : > { %v758_v51 = vsub.f32 %v1807_v46, %v679_v61  ;;  %v759_v9 = vsub.f32 %v1809_v47, %v679_v61  ;;  %v752_v46 = vsub.f32 %v1785_v35, %v670_v2  ;;  %v753_v47 = vsub.f32 %v1787_v36, %v670_v2 }
 0x267   : > { %v1906_v11 = vpop.f32.mrf.mxu2  ;;  %v1908_v10 = vpop.f32.mrf.mxu3  ;;  %v750_v36 = vsub.f32 %v1777_v32, %v667_v56  ;;  %v748_v2 = vsub.f32 %v1771_v29, %v1892_v57 }
 0x268   : > { %v852_v3 = vmul.f32 1.442695, %v758_v51  ;;  %v722_v4 = vmax.f32 %v1906_v11, %v1908_v10  ;;  %v854_v58 = vmul.f32 1.442695, %v759_v9  ;;  %v846_v51 = vmul.f32 1.442695, %v755_v43  ;;  %v1354_v9 = vpop.eup %1353 }
 0x269   : > { %v840_v38 = vmul.f32 1.442695, %v752_v46  ;;  %v1356_v35 = vpop.eup %1355  ;;  %v842_v39 = vmul.f32 1.442695, %v753_v47  ;;  %v749_v43 = vsub.f32 %v1773_v30, %v1892_v57  ;;  %v836_v46 = vmul.f32 1.442695, %v750_v36  ;;  %v661_v47 = vpop.xlane.xlu2 %660 }
 0x26a   : > { %723 = vmax.xlane.f32.xlu2 %v722_v4  ;;  %1357 = vpow2.f32 %v852_v3  ;;  %v751_v3 = vsub.f32 %v1779_v33, %v667_v56  ;;  %v710_v33 = vmax.f32 %v1882_v48, %v1884_v49  ;;  %v719_v56 = vmax.f32 %v1898_v34, %v1900_v54 }
 0x26b   : > { %1359 = vpow2.f32 %v854_v58  ;;  %v747_v36 = vsub.f32 %v1767_v28, %v661_v47 }
 0x26c   : > { %1361 = vpow2.f32 %v844_v55  ;;  %v838_v32 = vmul.f32 1.442695, %v751_v3 }
 0x26d   : > { %v658_v61 = vpop.xlane.xlu1 %657  ;;  %1363 = vpow2.f32 %v846_v51  ;;  %v834_v51 = vmul.f32 1.442695, %v749_v43 }
 0x26e   : > { %1365 = vpow2.f32 %v840_v38  ;;  %v744_v30 = vsub.f32 %v1761_v25, %v658_v61 }
 0x26f   : > { %v1916_v5 = vpop.f32.mrf.mxu2  ;;  %v1918_v45 = vpop.f32.mrf.mxu3  ;;  %1367 = vpow2.f32 %v842_v39  ;;  %v746_v39 = vsub.f32 %v1765_v27, %v661_v47 }
 0x270   : > { %v725_v50 = vmax.f32 %v1916_v5, %v1918_v45  ;;  %v1358_v62 = vpop.eup %1357  ;;  %1369 = vpow2.f32 %v836_v46 }
 0x271   : > { %v1360_v58 = vpop.eup %1359  ;;  %v934_v4 = vpack.c.bf16 %v1358_v62, %v1354_v9  ;;  %1371 = vpow2.f32 %v838_v32  ;;  %v828_v25 = vmul.f32 1.442695, %v746_v39  ;;  %v655_v43 = vpop.xlane.xlu2 %654 }
 0x272   : > { %717 = vmax.xlane.f32.xlu2 %v716_v8  ;;  %726 = vmax.xlane.f32.xlu1 %v725_v50  ;;  %v935_v42 = vpack.c.bf16 %v1360_v58, %v1356_v35  ;;  %v1362_v55 = vpop.eup %1361  ;;  %v832_v50 = vmul.f32 1.442695, %v748_v2  ;;  %v745_v8 = vsub.f32 %v1763_v26, %v658_v61  ;;  %v824_v58 = vmul.f32 1.442695, %v744_v30 }
 0x273   : > { %982 = vmatpush.bf16.xpose.msrb.mxu0 %v934_v4  ;;  %v1364_v29 = vpop.eup %1363  ;;  %v704_v2 = vmax.f32 %v1871_v37, %v1873_v40  ;;  %v713_v26 = vmax.f32 %v1888_v52, %v1890_v53  ;;  %v698_v30 = vmax.f32 %v1858_v6, %v1860_v7 }
 0x274   : > { %1005 = vmatpush.bf16.xpose.msrb.mxu1 %v935_v42  ;;  %v1366_v38 = vpop.eup %1365  ;;  %1373 = vpow2.f32 %v832_v50  ;;  %v826_v3 = vmul.f32 1.442695, %v745_v8  ;;  %v830_v42 = vmul.f32 1.442695, %v747_v36  ;;  %v742_v50 = vsub.f32 %v1755_v23, %v655_v43 }
 0x275   : > { %v652_v9 = vpop.xlane.xlu1 %651  ;;  %v1368_v57 = vpop.eup %1367  ;;  %v932_v35 = vpack.c.bf16 %v1362_v55, %v1366_v38  ;;  %1375 = vpow2.f32 %v834_v51 }
 0x276   : > { %v933_v62 = vpack.c.bf16 %v1364_v29, %v1368_v57  ;;  %v1370_v4 = vpop.eup %1369  ;;  %1377 = vpow2.f32 %v824_v58  ;;  %v740_v46 = vsub.f32 %v1751_v21, %v652_v9  ;;  %v741_v32 = vsub.f32 %v1753_v22, %v652_v9  ;;  %v646_v57 = vpop.xlane.xlu0 %645 }
 0x277   : > { %v1372_v61 = vpop.eup %1371  ;;  %1379 = vpow2.f32 %v826_v3  ;;  %v820_v38 = vmul.f32 1.442695, %v742_v50  ;;  %v707_v22 = vmax.f32 %v1875_v41, %v1877_v44  ;;  %v736_v36 = vsub.f32 %v1739_v16, %v646_v57 }
 0x278   : > { %1381 = vpow2.f32 %v828_v25  ;;  %v816_v29 = vmul.f32 1.442695, %v740_v46  ;;  %v818_v51 = vmul.f32 1.442695, %v741_v32  ;;  %v737_v3 = vsub.f32 %v1741_v17, %v646_v57 }
 0x279   : > { %1383 = vpow2.f32 %v830_v42  ;;  %v692_v42 = vmax.f32 %v1843_v0, %v1845_v1 }
 0x27a   : > { %711 = vmax.xlane.f32.xlu2 %v710_v33  ;;  %720 = vmax.xlane.f32.xlu1 %v719_v56  ;;  %v1374_v27 = vpop.eup %1373  ;;  %v743_v56 = vsub.f32 %v1757_v24, %v655_v43  ;;  %1385 = vpow2.f32 %v816_v29  ;;  %v810_v43 = vmul.f32 1.442695, %v737_v3 }
 0x27b   : > { %983 = vmatpush.bf16.xpose.msrb.mxu0 %v932_v35  ;;  %v1376_v28 = vpop.eup %1375  ;;  %v930_v55 = vpack.c.bf16 %v1370_v4, %v1374_v27  ;;  %1387 = vpow2.f32 %v818_v51 }
 0x27c   : > { %1006 = vmatpush.bf16.xpose.msrb.mxu1 %v933_v62  ;;  %v931_v33 = vpack.c.bf16 %v1372_v61, %v1376_v28  ;;  %v1378_v21 = vpop.eup %1377  ;;  %v822_v8 = vmul.f32 1.442695, %v743_v56  ;;  %1389 = vpow2.f32 %v820_v38  ;;  %v808_v61 = vmul.f32 1.442695, %v736_v36  ;;  %v2115_v36 = vld [vmem:[#allocation8_spill] sm:$0xff] }
 0x27d   : > { %v649_v47 = vpop.xlane.xlu1 %648  ;;  %v1380_v9 = vpop.eup %1379 }
 0x27e   : > { %v1382_v23 = vpop.eup %1381  ;;  %v738_v35 = vsub.f32 %v1745_v19, %v649_v47  ;;  %v739_v39 = vsub.f32 %v1747_v20, %v649_v47  ;;  %1391 = vpow2.f32 %v822_v8  ;;  %v701_v20 = vmax.f32 %v1862_v18, %v1864_v31 }
 0x27f   : > { %v1384_v24 = vpop.eup %1383  ;;  %v928_v62 = vpack.c.bf16 %v1382_v23, %v1378_v21  ;;  %v2110_v21 = vld [vmem:[#allocation16_spill] sm:$0xff]  ;;  %v2113_v23 = vld [vmem:[#allocation10_spill] sm:$0xff] }
 0x280   : > { %v929_v58 = vpack.c.bf16 %v1384_v24, %v1380_v9  ;;  %v812_v25 = vmul.f32 1.442695, %v738_v35  ;;  %v814_v19 = vmul.f32 1.442695, %v739_v39  ;;  %v686_v38 = vmax.f32 %v2110_v21, %v1833_v59  ;;  %v2114_v24 = vld [vmem:[#allocation11_spill] sm:$0xff] }
 0x282   : > { %705 = vmax.xlane.f32.xlu2 %v704_v2  ;;  %714 = vmax.xlane.f32.xlu1 %v713_v26  ;;  %v640_v2 = vpop.xlane.xlu2 %639  ;;  %v1386_v26 = vpop.eup %1385  ;;  %1393 = vpow2.f32 %v812_v25 }
 0x283   : > { %984 = vmatpush.bf16.xpose.msrb.mxu0 %v930_v55  ;;  %v1388_v16 = vpop.eup %1387  ;;  %1395 = vpow2.f32 %v814_v19  ;;  %v732_v47 = vsub.f32 %v1729_v12, %v640_v2  ;;  %v733_v50 = vsub.f32 %v1731_v13, %v640_v2 }
 0x284   : > { %1007 = vmatpush.bf16.xpose.msrb.mxu1 %v931_v33  ;;  %v1390_v27 = vpop.eup %1389  ;;  %1397 = vpow2.f32 %v808_v61 }
 0x285   : > { %v643_v4 = vpop.xlane.xlu1 %642  ;;  %v1392_v46 = vpop.eup %1391  ;;  %v926_v32 = vpack.c.bf16 %v1390_v27, %v1386_v26  ;;  %1399 = vpow2.f32 %v810_v43  ;;  %v800_v51 = vmul.f32 1.442695, %v732_v47  ;;  %v802_v57 = vmul.f32 1.442695, %v733_v50  ;;  %v2119_v43 = vld [vmem:[#allocation18_spill] sm:$0xff]  ;;  %v2120_v27 = vld [vmem:[#allocation17_spill] sm:$0xff] }
 0x286   : > { %v734_v17 = vsub.f32 %v1733_v14, %v643_v4  ;;  %v735_v28 = vsub.f32 %v1735_v15, %v643_v4  ;;  %v927_v55 = vpack.c.bf16 %v1392_v46, %v1388_v16  ;;  %v2112_v15 = vld [vmem:[#allocation19_spill] sm:$0xff]  ;;  %v2116_v4 = vld [vmem:[#allocation9_spill] sm:$0xff]  ;;  %v286_v47 = vpop.f32.mrf.mxu0 }
 0x288   : > { %v804_v33 = vmul.f32 1.442695, %v734_v17  ;;  %v806_v56 = vmul.f32 1.442695, %v735_v28  ;;  %v1394_v14 = vpop.eup %1393  ;;  %v689_v17 = vmax.f32 %v2120_v27, %v2119_v43 }
 0x289   : > { %v1396_v9 = vpop.eup %1395 }
 0x28a   : > { %699 = vmax.xlane.f32.xlu2 %v698_v30  ;;  %708 = vmax.xlane.f32.xlu1 %v707_v22  ;;  %v2111_v30 = vld [vmem:[#allocation20_spill] sm:$0xff]  ;;  %v634_v12 = vpop.xlane.xlu2 %633  ;;  %v1398_v8 = vpop.eup %1397  ;;  %1401 = vpow2.f32 %v804_v33 }
 0x28b   : > { %985 = vmatpush.bf16.xpose.msrb.mxu0 %v928_v62  ;;  %v695_v22 = vmax.f32 %v2112_v15, %v2111_v30  ;;  %v1400_v35 = vpop.eup %1399  ;;  %1403 = vpow2.f32 %v806_v56  ;;  %v924_v62 = vpack.c.bf16 %v1394_v14, %v1398_v8  ;;  %v729_v25 = vsub.f32 %v2116_v4, %v634_v12  ;;  %v2121_v14 = vld [vmem:[#allocation15_spill] sm:$0xff] }
 0x28c   : > { %1008 = vmatpush.bf16.xpose.msrb.mxu1 %v929_v58  ;;  %1405 = vpow2.f32 %v800_v51  ;;  %v728_v58 = vsub.f32 %v2115_v36, %v634_v12  ;;  %v925_v3 = vpack.c.bf16 %v1396_v9, %v1400_v35  ;;  %v2122_v51 = vld [vmem:[#allocation14_spill] sm:$0xff] }
 0x28d   : > { %v637_v29 = vpop.xlane.xlu1 %636  ;;  %1407 = vpow2.f32 %v802_v57  ;;  %v794_v28 = vmul.f32 1.442695, %v729_v25 }
 0x28e   : > { %v730_v13 = vsub.f32 %v2113_v23, %v637_v29  ;;  %v731_v39 = vsub.f32 %v2114_v24, %v637_v29  ;;  %v792_v61 = vmul.f32 1.442695, %v728_v58  ;;  %v288_v12 = vpop.f32.mrf.mxu0 }
 0x290   : > { %v796_v2 = vmul.f32 1.442695, %v730_v13  ;;  %v798_v19 = vmul.f32 1.442695, %v731_v39  ;;  %v1402_v26 = vpop.eup %1401 }
 0x291   : > { %v1404_v46 = vpop.eup %1403 }
 0x292   : > { %693 = vmax.xlane.f32.xlu2 %v692_v42  ;;  %702 = vmax.xlane.f32.xlu1 %v701_v20  ;;  %v2117_v42 = vld [vmem:[#allocation13_spill] sm:$0xff]  ;;  %v2118_v20 = vld [vmem:[#allocation12_spill] sm:$0xff]  ;;  %1409 = vpow2.f32 %v796_v2 }
 0x293   : > { %986 = vmatpush.bf16.xpose.msrb.mxu0 %v926_v32  ;;  %v680_v16 = vmax.f32 %v2118_v20, %v2117_v42  ;;  %v1406_v32 = vpop.eup %1405  ;;  %1411 = vpow2.f32 %v798_v19 }
 0x294   : > { %1009 = vmatpush.bf16.xpose.msrb.mxu1 %v927_v55  ;;  %v325_v55 = vpop.f32.mrf.mxu1  ;;  %v1408_v50 = vpop.eup %1407  ;;  %v922_v33 = vpack.c.bf16 %v1402_v26, %v1406_v32  ;;  %1413 = vpow2.f32 %v792_v61 }
 0x295   : > { %v923_v56 = vpack.c.bf16 %v1404_v46, %v1408_v50  ;;  %1415 = vpow2.f32 %v794_v28 }
 0x296   : > { %v291_v25 = vpop.f32.mrf.mxu0 }
 0x298   : > { %v1410_v29 = vpop.eup %1409 }
 0x299   : > { %v1412_v9 = vpop.eup %1411 }
 0x29a   : > { %687 = vmax.xlane.f32.xlu2 %v686_v38  ;;  %696 = vmax.xlane.f32.xlu1 %v695_v22  ;;  %v683_v38 = vmax.f32 %v2122_v51, %v2121_v14  ;;  %v346_v22 = vpack.c.bf16 %v325_v55, %v286_v47  ;;  %v1414_v57 = vpop.eup %1413 }
 0x29b   : > { %987 = vmatpush.bf16.xpose.msrb.mxu0 %v924_v62  ;;  %v1416_v23 = vpop.eup %1415  ;;  %v920_v13 = vpack.c.bf16 %v1410_v29, %v1414_v57 }
 0x29c   : > { %1010 = vmatpush.bf16.xpose.msrb.mxu1 %v925_v3  ;;  %v327_v8 = vpop.f32.mrf.mxu1  ;;  %v921_v24 = vpack.c.bf16 %v1412_v9, %v1416_v23  ;;  %v958_v39 = vunpack.c.l.b16 %v346_v22  ;;  %v959_v62 = vunpack.c.h.b16 %v346_v22 }
 0x29d   : > { %v347_v35 = vpack.c.bf16 %v327_v8, %v288_v12 }
 0x29e   : > { %v293_v26 = vpop.f32.mrf.mxu0 }
 0x29f   : > { %v960_v36 = vunpack.c.l.b16 %v347_v35  ;;  %v961_v58 = vunpack.c.h.b16 %v347_v35 }
 0x2a1   : > { %v1976_v3 = vpack.c.b16 %v960_v36, %v958_v39  ;;  %v1978_v4 = vpack.c.b16 %v961_v58, %v959_v62 }
 0x2a2   : > { %681 = vmax.xlane.f32.xlu2 %v680_v16  ;;  %690 = vmax.xlane.f32.xlu1 %v689_v17 }
 0x2a3   : > { %988 = vmatpush.bf16.xpose.msrb.mxu0 %v922_v33 }
 0x2a4   : > { %1011 = vmatpush.bf16.xpose.msrb.mxu1 %v923_v56  ;;  %v330_v2 = vpop.f32.mrf.mxu1 }
 0x2a5   : > { %v348_v19 = vpack.c.bf16 %v330_v2, %v291_v25 }
 0x2a6   : > { %v296_v50 = vpop.f32.mrf.mxu0 }
 0x2a7   : > { %v962_v17 = vunpack.c.l.b16 %v348_v19  ;;  %v963_v46 = vunpack.c.h.b16 %v348_v19 }
 0x2aa   : > { %684 = vmax.xlane.f32.xlu1 %v683_v38 }
 0x2ab   : > { %989 = vmatpush.bf16.xpose.msrb.mxu0 %v920_v13 }
 0x2ac   : > { %1012 = vmatpush.bf16.xpose.msrb.mxu1 %v921_v24  ;;  %v332_v61 = vpop.f32.mrf.mxu1 }
 0x2ad   : > { %v349_v16 = vpack.c.bf16 %v332_v61, %v293_v26 }
 0x2ae   : > { %v298_v29 = vpop.f32.mrf.mxu0 }
 0x2af   : > { %v964_v28 = vunpack.c.l.b16 %v349_v16  ;;  %v965_v32 = vunpack.c.h.b16 %v349_v16 }
 0x2b1   : > { %v1982_v47 = vpack.c.b16 %v964_v28, %v962_v17  ;;  %v1984_v55 = vpack.c.b16 %v965_v32, %v963_v46 }
 0x2b2   : > { %990 = vmatmul.bf16.vlgmr.msrb.gmra.mxu0 %v1976_v3 }
 0x2b3   : > { %1013 = vmatmul.bf16.vlgmr.msrb.gmra.mxu1 %v1978_v4 }
 0x2b4   : > { %v335_v33 = vpop.f32.mrf.mxu1 }
 0x2b5   : > { %v350_v56 = vpack.c.bf16 %v335_v33, %v296_v50 }
 0x2b7   : > { %v966_v22 = vunpack.c.l.b16 %v350_v56  ;;  %v967_v9 = vunpack.c.h.b16 %v350_v56 }
 0x2bc   : > { %v337_v38 = vpop.f32.mrf.mxu1 }
 0x2bd   : > { %v351_v57 = vpack.c.bf16 %v337_v38, %v298_v29 }
 0x2bf   : > { %v968_v12 = vunpack.c.l.b16 %v351_v57  ;;  %v969_v8 = vunpack.c.h.b16 %v351_v57 }
 0x2c1   : > { %v1988_v23 = vpack.c.b16 %v968_v12, %v966_v22  ;;  %v1990_v13 = vpack.c.b16 %v969_v8, %v967_v9 }
 0x2c2   : > { %995 = vmatmul.bf16.gmra.mxu0 %v1982_v47 }
 0x2c3   : > { %1018 = vmatmul.bf16.gmra.mxu1 %v1984_v55 }
 0x2d2   : > { %1000 = vmatmul.bf16.gmra.mxu0 %v1988_v23 }
 0x2d3   : > { %1023 = vmatmul.bf16.gmra.mxu1 %v1990_v13 }
 0x2dd   : > { %v724_v35 = vpop.xlane.xlu2 %723 }
 0x2de   : > { %v788_v24 = vsub.f32 %v1906_v11, %v724_v35  ;;  %v789_v39 = vsub.f32 %v1908_v10, %v724_v35 }
 0x2e0   : > { %v912_v58 = vmul.f32 1.442695, %v788_v24  ;;  %v914_v19 = vmul.f32 1.442695, %v789_v39 }
 0x2e2   : > { %1417 = vpow2.f32 %v912_v58 }
 0x2e3   : > { %1419 = vpow2.f32 %v914_v19 }
 0x2e5   : > { %v718_v62 = vpop.xlane.xlu2 %717  ;;  %v727_v36 = vpop.xlane.xlu1 %726 }
 0x2e6   : > { %v790_v25 = vsub.f32 %v1916_v5, %v727_v36  ;;  %v791_v2 = vsub.f32 %v1918_v45, %v727_v36  ;;  %v784_v16 = vsub.f32 %v1894_v60, %v718_v62  ;;  %v785_v17 = vsub.f32 %v1896_v63, %v718_v62 }
 0x2e8   : > { %v916_v26 = vmul.f32 1.442695, %v790_v25  ;;  %v918_v61 = vmul.f32 1.442695, %v791_v2  ;;  %v904_v46 = vmul.f32 1.442695, %v784_v16  ;;  %v1418_v45 = vpop.eup %1417 }
 0x2e9   : > { %v906_v32 = vmul.f32 1.442695, %v785_v17  ;;  %v1420_v33 = vpop.eup %1419 }
 0x2ea   : > { %1421 = vpow2.f32 %v916_v26 }
 0x2eb   : > { %1423 = vpow2.f32 %v918_v61 }
 0x2ec   : > { %1425 = vpow2.f32 %v904_v46 }
 0x2ed   : > { %v712_v11 = vpop.xlane.xlu2 %711  ;;  %v721_v10 = vpop.xlane.xlu1 %720  ;;  %1427 = vpow2.f32 %v906_v32 }
 0x2ee   : > { %v786_v28 = vsub.f32 %v1898_v34, %v721_v10  ;;  %v787_v5 = vsub.f32 %v1900_v54, %v721_v10  ;;  %v780_v60 = vsub.f32 %v1882_v48, %v712_v11  ;;  %v781_v63 = vsub.f32 %v1884_v49, %v712_v11 }
 0x2f0   : > { %v908_v50 = vmul.f32 1.442695, %v786_v28  ;;  %v910_v56 = vmul.f32 1.442695, %v787_v5  ;;  %v1422_v29 = vpop.eup %1421  ;;  %v896_v57 = vmul.f32 1.442695, %v780_v60 }
 0x2f1   : > { %v1424_v38 = vpop.eup %1423  ;;  %v950_v22 = vpack.c.bf16 %v1422_v29, %v1418_v45  ;;  %v898_v35 = vmul.f32 1.442695, %v781_v63 }
 0x2f2   : > { %1429 = vpow2.f32 %v908_v50  ;;  %v951_v9 = vpack.c.bf16 %v1424_v38, %v1420_v33  ;;  %v1426_v24 = vpop.eup %1425 }
 0x2f3   : > { %1431 = vpow2.f32 %v910_v56  ;;  %1028 = vmatpush.bf16.xpose.msra.mxu0 %v950_v22  ;;  %v1428_v39 = vpop.eup %1427 }
 0x2f4   : > { %1051 = vmatpush.bf16.xpose.msra.mxu1 %v951_v9  ;;  %1433 = vpow2.f32 %v896_v57 }
 0x2f5   : > { %v706_v34 = vpop.xlane.xlu2 %705  ;;  %v715_v54 = vpop.xlane.xlu1 %714  ;;  %1435 = vpow2.f32 %v898_v35 }
 0x2f6   : > { %v782_v12 = vsub.f32 %v1888_v52, %v715_v54  ;;  %v783_v8 = vsub.f32 %v1890_v53, %v715_v54  ;;  %v776_v49 = vsub.f32 %v1871_v37, %v706_v34  ;;  %v777_v25 = vsub.f32 %v1873_v40, %v706_v34 }
 0x2f8   : > { %v900_v48 = vmul.f32 1.442695, %v782_v12  ;;  %v902_v62 = vmul.f32 1.442695, %v783_v8  ;;  %v1430_v36 = vpop.eup %1429  ;;  %v888_v26 = vmul.f32 1.442695, %v776_v49 }
 0x2f9   : > { %v1432_v58 = vpop.eup %1431  ;;  %v948_v2 = vpack.c.bf16 %v1430_v36, %v1426_v24  ;;  %v890_v17 = vmul.f32 1.442695, %v777_v25 }
 0x2fa   : > { %1437 = vpow2.f32 %v900_v48  ;;  %v949_v19 = vpack.c.bf16 %v1432_v58, %v1428_v39  ;;  %v1434_v11 = vpop.eup %1433 }
 0x2fb   : > { %1439 = vpow2.f32 %v902_v62  ;;  %1029 = vmatpush.bf16.xpose.msra.mxu0 %v948_v2  ;;  %v1436_v10 = vpop.eup %1435 }
 0x2fc   : > { %1052 = vmatpush.bf16.xpose.msra.mxu1 %v949_v19  ;;  %1441 = vpow2.f32 %v888_v26 }
 0x2fd   : > { %v700_v52 = vpop.xlane.xlu2 %699  ;;  %v709_v53 = vpop.xlane.xlu1 %708  ;;  %1443 = vpow2.f32 %v890_v17 }
 0x2fe   : > { %v778_v61 = vsub.f32 %v1875_v41, %v709_v53  ;;  %v779_v16 = vsub.f32 %v1877_v44, %v709_v53  ;;  %v772_v40 = vsub.f32 %v1858_v6, %v700_v52  ;;  %v773_v32 = vsub.f32 %v1860_v7, %v700_v52 }
 0x300   : > { %v892_v37 = vmul.f32 1.442695, %v778_v61  ;;  %v894_v46 = vmul.f32 1.442695, %v779_v16  ;;  %v1438_v28 = vpop.eup %1437  ;;  %v880_v33 = vmul.f32 1.442695, %v772_v40 }
 0x301   : > { %v1440_v5 = vpop.eup %1439  ;;  %v946_v45 = vpack.c.bf16 %v1438_v28, %v1434_v11  ;;  %v882_v60 = vmul.f32 1.442695, %v773_v32 }
 0x302   : > { %1445 = vpow2.f32 %v892_v37  ;;  %v947_v50 = vpack.c.bf16 %v1440_v5, %v1436_v10  ;;  %v1442_v38 = vpop.eup %1441 }
 0x303   : > { %1447 = vpow2.f32 %v894_v46  ;;  %1030 = vmatpush.bf16.xpose.msra.mxu0 %v946_v45  ;;  %v1444_v63 = vpop.eup %1443 }
 0x304   : > { %1053 = vmatpush.bf16.xpose.msra.mxu1 %v947_v50  ;;  %1449 = vpow2.f32 %v880_v33 }
 0x305   : > { %v694_v41 = vpop.xlane.xlu2 %693  ;;  %v703_v44 = vpop.xlane.xlu1 %702  ;;  %1451 = vpow2.f32 %v882_v60 }
 0x306   : > { %v774_v56 = vsub.f32 %v1862_v18, %v703_v44  ;;  %v775_v29 = vsub.f32 %v1864_v31, %v703_v44  ;;  %v768_v7 = vsub.f32 %v1843_v0, %v694_v41  ;;  %v769_v54 = vsub.f32 %v1845_v1, %v694_v41 }
 0x308   : > { %v884_v6 = vmul.f32 1.442695, %v774_v56  ;;  %v886_v22 = vmul.f32 1.442695, %v775_v29  ;;  %v1446_v9 = vpop.eup %1445  ;;  %v872_v8 = vmul.f32 1.442695, %v768_v7 }
 0x309   : > { %v1448_v34 = vpop.eup %1447  ;;  %v944_v57 = vpack.c.bf16 %v1446_v9, %v1442_v38  ;;  %v874_v48 = vmul.f32 1.442695, %v769_v54 }
 0x30a   : > { %1453 = vpow2.f32 %v884_v6  ;;  %v945_v12 = vpack.c.bf16 %v1448_v34, %v1444_v63  ;;  %v1450_v39 = vpop.eup %1449 }
 0x30b   : > { %1455 = vpow2.f32 %v886_v22  ;;  %1031 = vmatpush.bf16.xpose.msra.mxu0 %v944_v57  ;;  %v1452_v62 = vpop.eup %1451 }
 0x30c   : > { %1054 = vmatpush.bf16.xpose.msra.mxu1 %v945_v12  ;;  %1457 = vpow2.f32 %v872_v8 }
 0x30d   : > { %v688_v18 = vpop.xlane.xlu2 %687  ;;  %v697_v31 = vpop.xlane.xlu1 %696  ;;  %1459 = vpow2.f32 %v874_v48 }
 0x30e   : > { %v770_v35 = vsub.f32 %v2112_v15, %v697_v31  ;;  %v771_v24 = vsub.f32 %v2111_v30, %v697_v31  ;;  %v764_v1 = vsub.f32 %v2110_v21, %v688_v18  ;;  %v765_v25 = vsub.f32 %v1833_v59, %v688_v18 }
 0x310   : > { %v876_v0 = vmul.f32 1.442695, %v770_v35  ;;  %v878_v36 = vmul.f32 1.442695, %v771_v24  ;;  %v1454_v49 = vpop.eup %1453  ;;  %v864_v52 = vmul.f32 1.442695, %v764_v1 }
 0x311   : > { %v1456_v58 = vpop.eup %1455  ;;  %v942_v2 = vpack.c.bf16 %v1454_v49, %v1450_v39  ;;  %v866_v61 = vmul.f32 1.442695, %v765_v25 }
 0x312   : > { %1461 = vpow2.f32 %v876_v0  ;;  %v943_v19 = vpack.c.bf16 %v1456_v58, %v1452_v62  ;;  %v1458_v16 = vpop.eup %1457 }
 0x313   : > { %1463 = vpow2.f32 %v878_v36  ;;  %1032 = vmatpush.bf16.xpose.msra.mxu0 %v942_v2  ;;  %v1460_v11 = vpop.eup %1459 }
 0x314   : > { %1055 = vmatpush.bf16.xpose.msra.mxu1 %v943_v19  ;;  %1465 = vpow2.f32 %v864_v52 }
 0x315   : > { %v682_v15 = vpop.xlane.xlu2 %681  ;;  %v691_v30 = vpop.xlane.xlu1 %690  ;;  %1467 = vpow2.f32 %v866_v61 }
 0x316   : > { %v766_v53 = vsub.f32 %v2120_v27, %v691_v30  ;;  %v767_v26 = vsub.f32 %v2119_v43, %v691_v30  ;;  %v760_v21 = vsub.f32 %v2118_v20, %v682_v15  ;;  %v761_v59 = vsub.f32 %v2117_v42, %v682_v15 }
 0x318   : > { %v868_v17 = vmul.f32 1.442695, %v766_v53  ;;  %v870_v37 = vmul.f32 1.442695, %v767_v26  ;;  %v1462_v10 = vpop.eup %1461  ;;  %v856_v40 = vmul.f32 1.442695, %v760_v21 }
 0x319   : > { %v1464_v46 = vpop.eup %1463  ;;  %v940_v28 = vpack.c.bf16 %v1462_v10, %v1458_v16  ;;  %v858_v27 = vmul.f32 1.442695, %v761_v59 }
 0x31a   : > { %1469 = vpow2.f32 %v868_v17  ;;  %v941_v5 = vpack.c.bf16 %v1464_v46, %v1460_v11  ;;  %v1466_v45 = vpop.eup %1465 }
 0x31b   : > { %1471 = vpow2.f32 %v870_v37  ;;  %1033 = vmatpush.bf16.xpose.msra.mxu0 %v940_v28  ;;  %v1468_v41 = vpop.eup %1467 }
 0x31c   : > { %1056 = vmatpush.bf16.xpose.msra.mxu1 %v941_v5  ;;  %1473 = vpow2.f32 %v856_v40 }
 0x31d   : > { %v685_v43 = vpop.xlane.xlu1 %684  ;;  %1475 = vpow2.f32 %v858_v27 }
 0x31e   : > { %v762_v20 = vsub.f32 %v2122_v51, %v685_v43  ;;  %v763_v32 = vsub.f32 %v2121_v14, %v685_v43 }
 0x320   : > { %v860_v42 = vmul.f32 1.442695, %v762_v20  ;;  %v862_v50 = vmul.f32 1.442695, %v763_v32  ;;  %v1470_v44 = vpop.eup %1469 }
 0x321   : > { %v1472_v33 = vpop.eup %1471  ;;  %v938_v56 = vpack.c.bf16 %v1470_v44, %v1466_v45 }
 0x322   : > { %1477 = vpow2.f32 %v860_v42  ;;  %v939_v29 = vpack.c.bf16 %v1472_v33, %v1468_v41  ;;  %v1474_v60 = vpop.eup %1473 }
 0x323   : > { %1479 = vpow2.f32 %v862_v50  ;;  %1034 = vmatpush.bf16.xpose.msra.mxu0 %v938_v56  ;;  %v1476_v38 = vpop.eup %1475 }
 0x324   : > { %1057 = vmatpush.bf16.xpose.msra.mxu1 %v939_v29 }
 0x328   : > { %v1478_v6 = vpop.eup %1477 }
 0x329   : > { %v1480_v51 = vpop.eup %1479  ;;  %v936_v63 = vpack.c.bf16 %v1478_v6, %v1474_v60 }
 0x32a   : > { %v937_v14 = vpack.c.bf16 %v1480_v51, %v1476_v38 }
 0x32b   : > { %1035 = vmatpush.bf16.xpose.msra.mxu0 %v936_v63 }
 0x32c   : > { %1058 = vmatpush.bf16.xpose.msra.mxu1 %v937_v14 }
 0x32f   : > { %v991_v22 = vpop.f32.mrf.mxu0 }
 0x330   : > { %v1014_v9 = vpop.f32.mrf.mxu1 }
 0x332   : > { %1036 = vmatmul.bf16.vlgmr.msra.gmra.mxu0 %v1976_v3 }
 0x333   : > { %1059 = vmatmul.bf16.vlgmr.msra.gmra.mxu1 %v1978_v4  ;;  %v1015_v4 = vadd.f32 %v1014_v9, %v991_v22 }
 0x337   : > { %v993_v7 = vpop.f32.mrf.mxu0 }
 0x338   : > { %v1016_v34 = vpop.f32.mrf.mxu1 }
 0x339   : > { %v1017_v24 = vadd.f32 %v1016_v34, %v993_v7 }
 0x33f   : > { %v996_v54 = vpop.f32.mrf.mxu0 }
 0x340   : > { %v1019_v57 = vpop.f32.mrf.mxu1 }
 0x341   : > { %v1020_v48 = vadd.f32 %v1019_v57, %v996_v54 }
 0x342   : > { %1041 = vmatmul.bf16.gmra.mxu0 %v1982_v47 }
 0x343   : > { %1064 = vmatmul.bf16.gmra.mxu1 %v1984_v55 }
 0x347   : > { %v998_v12 = vpop.f32.mrf.mxu0 }
 0x348   : > { %v1021_v18 = vpop.f32.mrf.mxu1 }
 0x349   : > { %v1022_v47 = vadd.f32 %v1021_v18, %v998_v12 }
 0x34f   : > { %v1001_v31 = vpop.f32.mrf.mxu0 }
 0x350   : > { %v1024_v8 = vpop.f32.mrf.mxu1 }
 0x351   : > { %v1025_v35 = vadd.f32 %v1024_v8, %v1001_v31 }
 0x352   : > { %1046 = vmatmul.bf16.gmra.mxu0 %v1988_v23 }
 0x353   : > { %1069 = vmatmul.bf16.gmra.mxu1 %v1990_v13  ;;  %1481 = vrcp.f32 %v1025_v35 }
 0x357   : > { %v1003_v3 = vpop.f32.mrf.mxu0 }
 0x358   : > { %v1026_v39 = vpop.f32.mrf.mxu1 }
 0x359   : > { %v1482_v0 = vpop.eup %1481 }
 0x35a   : > { %v1076_v62 = vperm.slane %v1482_v0, 0 }
 0x35c   : > { %v1078_v55 = vmul.f32 %v1076_v62, %v1015_v4  ;;  %v1080_v36 = vmul.f32 %v1076_v62, %v1017_v24  ;;  %v1082_v49 = vmul.f32 %v1076_v62, %v1020_v48  ;;  %v1084_v1 = vmul.f32 %v1076_v62, %v1022_v47 }
 0x35e   : > { %1086 = vst [vmem:[%s2033_s22] sm:$0xff] %v1078_v55 }
 0x35f   : > { %1088 = vst [vmem:[%s2033_s22 + $0x10] sm:$0xff] %v1080_v36 }
 0x360   : > { %1090 = vst [vmem:[%s2033_s22 + $0x20] sm:$0xff] %v1082_v49 }
 0x361   : > { %1092 = vst [vmem:[%s2033_s22 + $0x30] sm:$0xff] %v1084_v1 }
 0x3af   : > { %v1037_v23 = vpop.f32.mrf.mxu0 }
 0x3b0   : > { %v1060_v13 = vpop.f32.mrf.mxu1 }
 0x3b1   : > { %v1061_v17 = vadd.f32 %v1060_v13, %v1037_v23 }
 0x3b7   : > { %v1039_v58 = vpop.f32.mrf.mxu0 }
 0x3b8   : > { %v1062_v25 = vpop.f32.mrf.mxu1 }
 0x3b9   : > { %v1063_v11 = vadd.f32 %v1062_v25, %v1039_v58 }
 0x3bf   : > { %v1042_v2 = vpop.f32.mrf.mxu0 }
 0x3c0   : > { %v1065_v19 = vpop.f32.mrf.mxu1 }
 0x3c1   : > { %v1066_v59 = vadd.f32 %v1065_v19, %v1042_v2 }
 0x3c7   : > { %v1044_v15 = vpop.f32.mrf.mxu0 }
 0x3c8   : > { %v1067_v30 = vpop.f32.mrf.mxu1 }
 0x3c9   : > { %v1068_v10 = vadd.f32 %v1067_v30, %v1044_v15 }
 0x3cf   : > { %v1047_v52 = vpop.f32.mrf.mxu0 }
 0x3d0   : > { %v1070_v53 = vpop.f32.mrf.mxu1 }
 0x3d1   : > { %v1071_v26 = vadd.f32 %v1070_v53, %v1047_v52 }
 0x3d3   : > { %1483 = vrcp.f32 %v1071_v26 }
 0x3d7   : > { %v1049_v61 = vpop.f32.mrf.mxu0 }
 0x3d8   : > { %v1072_v16 = vpop.f32.mrf.mxu1 }
 0x3d9   : > { %v1484_v21 = vpop.eup %1483 }
 0x3da   : > { %v1077_v37 = vperm.slane %v1484_v21, 0 }
 0x3dc   : > { %v1079_v46 = vmul.f32 %v1077_v37, %v1061_v17  ;;  %v1081_v28 = vmul.f32 %v1077_v37, %v1063_v11  ;;  %v1083_v40 = vmul.f32 %v1077_v37, %v1066_v59  ;;  %v1085_v5 = vmul.f32 %v1077_v37, %v1068_v10 }
 0x3de   : > { %1087 = vst [vmem:[%s2033_s22 + $0x8] sm:$0xff] %v1079_v46 }
 0x3df   : > { %1089 = vst [vmem:[%s2033_s22 + $0x18] sm:$0xff] %v1081_v28 }
 0x3e0   : > { %1091 = vst [vmem:[%s2033_s22 + $0x28] sm:$0xff] %v1083_v40 }
 0x3e1   : > { %1093 = vst [vmem:[%s2033_s22 + $0x38] sm:$0xff] %v1085_v5 }
 0x3e2   : > { %1542 = shalt.err (!%p1539_p7)
}
 0x3e3   : > { %s1585_s24 = smov 256   ;;  %s1586_s8 = smov 16  }
 0x3e4   : > { %1304 = dma.vmem_to_hbm [thread:$0]  (%p1648_p11), %s1108_s19, 1024, %s1110_s28, %s1095_s13, %s1585_s24, %s1585_s24, %s1586_s8  }
 0x3e5 PF: > { %s1124_s14 = sand.u32 1, %s1569_s9   ;;  %p1311_p8 = pnand %p1185_p9, %p1652_p12 }
 0x3e6   : > { %s1125_s16 = scalar_lea.sflag [#allocation4], %s1124_s14 }
 0x3e7   : > { %p1312_p10 = pneg %p1311_p8 }
 0x3e9   : > { %1564 = dma.done.wait (%p1312_p10), %s1125_s16, 1024  }
 0x3ea   : > { %1566 = vsyncadd (%p1312_p10), %s1125_s16, 4294966272  ;;  %p15_p0 = scmp.ge.s32.totalorder %s1627_s15, 4   ;;  %s2123_s9 = smov %s1573_s10 }
 0x3eb   : > { %s2124_s10 = smov %s1577_s11  ;;  %s2125_s11 = smov %s1639_s18 }
 0x3ec   : > { %s2126_s12 = smov %s1627_s15  ;;  %17 = sbr.rel (!%p15_p0) target bundleno = 5 (0x5), region = 73 }
 0x3f1   :  { %1131 = vsyncpa [#allocation3], 1 }
 0x3f2   :  { %1133 = vsyncpa [#allocation3 + $0x1], 1 }
 0x3f3   :  { %1134 = vsyncpa [#allocation4], 1 }
 0x3f4   :  { %1136 = vsyncpa [#allocation4 + $0x1], 1 }

</bundles_post_ra>
